<compile_context>
chip_gen: v7x
topology: tpu7x:2x2x1
jax: 0.10.0
libtpu: 0.0.40
codegen_flags: <defaults>
</compile_context>

<pallas_src>
import functools

import jax
import jax.numpy as jnp
import numpy as np
from jax import lax
from jax.experimental import pallas as pl
from jax.experimental.pallas import tpu as pltpu


def routing_kernel(x_ref, out_ref, g_ref, idx_ref, *, routing_nums, gram_dtype):
    n = x_ref.shape[0]

    # ---- One-time Gram matrix on the MXU: contract the feature axis of x with
    # ---- itself (no explicit x.T materialization), f32 accumulation. ----
    xg = x_ref[...]
    if gram_dtype is not None:
        xg = xg.astype(gram_dtype)
    g = lax.dot_general(
        xg, xg,
        dimension_numbers=(((1,), (1,)), ((), ())),
        preferred_element_type=jnp.float32,
    )                                                       # (N, N) f32
    g_ref[...] = g                       # park G in VMEM scratch (not live in loop)

    # Initial free-set row sums (taken == 0 everywhere): s[i] = sum_j G[i, j].
    s = jnp.sum(g, axis=0, keepdims=True)                   # (1, N) f32, lane-major

    col_ids = lax.broadcasted_iota(jnp.int32, (1, n), 1)    # lane-major
    taken = jnp.zeros((1, n), jnp.float32)

    # ---- Routing loop (routing_nums is tiny -> fully unrolled). ----
    for t in range(routing_nums):
        # argmax(softmax(1/(s/count)+taken)) == argmax(1/s+taken): count > 0.
        logits = 1.0 / s + taken
        m = jnp.max(logits)
        # first max on ties (matches np/torch argmax)
        winner = jnp.min(jnp.where(logits == m, col_ids, n))
        idx_ref[t] = winner.astype(jnp.int32)               # record winner in SMEM
        w = idx_ref[t]                                      # scalar index
        taken = taken - 100000.0 * (col_ids == w).astype(jnp.float32)
        # Incremental free-set update: O(N) VPU work, dynamic sublane read of one
        # G row from VMEM scratch (G symmetric) -- no per-iteration MXU mat-vec.
        s = s - g_ref[pl.ds(w, 1), :]

    # ---- Compaction: routing_nums row copies in original (ascending) order. ----
    idxs = [idx_ref[t] for t in range(routing_nums)]
    for a in range(routing_nums):            # tiny unrolled bubble-sort network
        for b in range(routing_nums - 1 - a):
            lo = jnp.minimum(idxs[b], idxs[b + 1])
            hi = jnp.maximum(idxs[b], idxs[b + 1])
            idxs[b], idxs[b + 1] = lo, hi
    for k in range(routing_nums):
        out_ref[pl.ds(k, 1), :] = x_ref[pl.ds(idxs[k], 1), :].astype(out_ref.dtype)


def routing_layer_forward(x, routing_nums=3, gram_dtype=None):
    """x: (N, D). Returns x[taken != 0] -- statically (routing_nums, D), rows in
    original order. gram_dtype=jnp.bfloat16 runs the Gram build on the MXU's
    native bf16 path (f32 accumulation); default keeps full f32 operands."""
    n, d = x.shape
    kernel = functools.partial(
        routing_kernel, routing_nums=routing_nums, gram_dtype=gram_dtype
    )
    return pl.pallas_call(
        kernel,
        out_shape=jax.ShapeDtypeStruct((routing_nums, d), x.dtype),
        in_specs=[pl.BlockSpec((n, d), lambda: (0, 0))],
        out_specs=pl.BlockSpec((routing_nums, d), lambda: (0, 0)),
        scratch_shapes=[
            pltpu.VMEM((n, n), jnp.float32),          # Gram matrix scratch
            pltpu.SMEM((routing_nums,), jnp.int32),   # winner indices
        ],
        compiler_params=pltpu.CompilerParams(vmem_limit_bytes=32 * 1024 * 1024),
    )(x)


def _reference_forward(x, routing_nums=3):
    """Pure numpy replica of the PyTorch module for verification."""
    x = np.asarray(x, dtype=np.float32)
    n = x.shape[0]
    taken = np.zeros(n, np.float32)
    for _ in range(routing_nums):
        mean_x = x[taken == 0].mean(0)
        s = x @ mean_x
        logits = 1.0 / s + taken
        z = logits - logits.max()
        probs = np.exp(z) / np.exp(z).sum()
        taken[int(np.argmax(probs))] += -100000.0
    return x[taken != 0]


if __name__ == "__main__":
    key = jax.random.PRNGKey(0)
    N, D = 8, 32
    x = jax.random.normal(key, (N, D), dtype=jnp.float32)

    out = routing_layer_forward(x, routing_nums=3)
    jax.block_until_ready(out)

    ref = _reference_forward(np.asarray(x), routing_nums=3)
    assert out.shape == ref.shape, (out.shape, ref.shape)
    assert np.allclose(np.asarray(out), ref, atol=1e-5), "mismatch vs reference"

    # Exercise the bf16-Gram MXU path (reviewed optimization for large shapes);
    # only the selection could differ from f32, and only on near-tied scores.
    out_bf16 = routing_layer_forward(x, routing_nums=3, gram_dtype=jnp.bfloat16)
    jax.block_until_ready(out_bf16)
    assert out_bf16.shape == ref.shape

    print("KERNEL_OK")
</pallas_src>

<mosaic_0001>
module attributes {stable_mosaic.version = 11 : i64} {
  func.func @routing_kernel(%arg0: memref<8x32xf32, #tpu.memory_space<vmem>>, %arg1: memref<3x32xf32, #tpu.memory_space<vmem>>, %arg2: memref<8x8xf32, #tpu.memory_space<vmem>>, %arg3: memref<3xi32, #tpu.memory_space<smem>>) attributes {dimension_semantics = [], scalar_prefetch = 0 : i64, scratch_operands = 2 : i64, tpu.core_type = #tpu.core_type<tc>} {
    %c0 = arith.constant 0 : index
    %c0_0 = arith.constant 0 : index
    %0 = vector.load %arg0[%c0, %c0_0] : memref<8x32xf32, #tpu.memory_space<vmem>>, vector<8x32xf32>
    %cst = arith.constant dense<0.000000e+00> : vector<8x8xf32>
    %1 = tpu.matmul %0, %0, %cst {dimension_numbers = #tpu.dot_dimension_numbers<[1], [1], [0], [0], [0, 0, 1, 0], [], []>} : vector<8x32xf32>, vector<8x32xf32>, vector<8x8xf32> -> vector<8x8xf32>
    %c0_1 = arith.constant 0 : index
    %c0_2 = arith.constant 0 : index
    %2 = vector.load %arg2[%c0_1, %c0_2] : memref<8x8xf32, #tpu.memory_space<vmem>>, vector<8x8xf32>
    tpu.vector_store %arg2[%c0_1, %c0_2], %1 {strides = array<i32>} : memref<8x8xf32, #tpu.memory_space<vmem>>, vector<8x8xf32>,
    %cst_3 = arith.constant dense<0.000000e+00> : vector<8xf32>
    %3 = vector.multi_reduction <add>, %1, %cst_3 [0] : vector<8x8xf32> to vector<8xf32>
    %4 = vector.shape_cast %3 : vector<8xf32> to vector<1x8xf32>
    %5 = tpu.iota {dimensions = array<i32: 1>} : vector<1x8xi32>
    %cst_4 = arith.constant 0.000000e+00 : f32
    %6 = vector.broadcast %cst_4 : f32 to vector<1x8xf32>
    %cst_5 = arith.constant 1.000000e+00 : f32
    %7 = vector.broadcast %cst_5 : f32 to vector<1x8xf32>
    %8 = arith.divf %7, %4 : vector<1x8xf32>
    %9 = arith.addf %8, %6 : vector<1x8xf32>
    %10 = vector.shape_cast %9 : vector<1x8xf32> to vector<1x1x8xf32>
    %cst_6 = arith.constant dense<0xFF800000> : vector<1xf32>
    %11 = vector.multi_reduction <maximumf>, %10, %cst_6 [1, 2] : vector<1x1x8xf32> to vector<1xf32>
    %12 = vector.shape_cast %11 : vector<1xf32> to vector<1x1x1xf32>
    %13 = vector.extract %12[0, 0, 0] : f32 from vector<1x1x1xf32>
    %14 = vector.broadcast %13 : f32 to vector<1x8xf32>
    %15 = arith.cmpf oeq, %9, %14 : vector<1x8xf32>
    %c8_i32 = arith.constant 8 : i32
    %16 = vector.broadcast %c8_i32 : i32 to vector<1x8xi32>
    %17 = arith.select %15, %5, %16 : vector<1x8xi1>, vector<1x8xi32>
    %18 = vector.shape_cast %17 : vector<1x8xi32> to vector<1x1x8xi32>
    %cst_7 = arith.constant dense<2147483647> : vector<1xi32>
    %19 = vector.multi_reduction <minsi>, %18, %cst_7 [1, 2] : vector<1x1x8xi32> to vector<1xi32>
    %20 = vector.shape_cast %19 : vector<1xi32> to vector<1x1x1xi32>
    %21 = vector.extract %20[0, 0, 0] : i32 from vector<1x1x1xi32>
    %c0_8 = arith.constant 0 : index
    %22 = memref.load %arg3[%c0_8] : memref<3xi32, #tpu.memory_space<smem>>
    memref.store %21, %arg3[%c0_8] : memref<3xi32, #tpu.memory_space<smem>>
    %c0_9 = arith.constant 0 : index
    %23 = memref.load %arg3[%c0_9] : memref<3xi32, #tpu.memory_space<smem>>
    %24 = vector.broadcast %23 : i32 to vector<1x8xi32>
    %25 = arith.cmpi eq, %5, %24 : vector<1x8xi32>
    %26 = arith.extui %25 : vector<1x8xi1> to vector<1x8xi32>
    %27 = arith.sitofp %26 : vector<1x8xi32> to vector<1x8xf32>
    %cst_10 = arith.constant 1.000000e+05 : f32
    %28 = vector.broadcast %cst_10 : f32 to vector<1x8xf32>
    %29 = arith.mulf %28, %27 : vector<1x8xf32>
    %30 = arith.subf %6, %29 : vector<1x8xf32>
    %31 = arith.index_cast %23 : i32 to index
    %c0_11 = arith.constant 0 : index
    %32 = vector.load %arg2[%31, %c0_11] : memref<8x8xf32, #tpu.memory_space<vmem>>, vector<1x8xf32>
    %33 = arith.subf %4, %32 : vector<1x8xf32>
    %cst_12 = arith.constant 1.000000e+00 : f32
    %34 = vector.broadcast %cst_12 : f32 to vector<1x8xf32>
    %35 = arith.divf %34, %33 : vector<1x8xf32>
    %36 = arith.addf %35, %30 : vector<1x8xf32>
    %37 = vector.shape_cast %36 : vector<1x8xf32> to vector<1x1x8xf32>
    %cst_13 = arith.constant dense<0xFF800000> : vector<1xf32>
    %38 = vector.multi_reduction <maximumf>, %37, %cst_13 [1, 2] : vector<1x1x8xf32> to vector<1xf32>
    %39 = vector.shape_cast %38 : vector<1xf32> to vector<1x1x1xf32>
    %40 = vector.extract %39[0, 0, 0] : f32 from vector<1x1x1xf32>
    %41 = vector.broadcast %40 : f32 to vector<1x8xf32>
    %42 = arith.cmpf oeq, %36, %41 : vector<1x8xf32>
    %c8_i32_14 = arith.constant 8 : i32
    %43 = vector.broadcast %c8_i32_14 : i32 to vector<1x8xi32>
    %44 = arith.select %42, %5, %43 : vector<1x8xi1>, vector<1x8xi32>
    %45 = vector.shape_cast %44 : vector<1x8xi32> to vector<1x1x8xi32>
    %cst_15 = arith.constant dense<2147483647> : vector<1xi32>
    %46 = vector.multi_reduction <minsi>, %45, %cst_15 [1, 2] : vector<1x1x8xi32> to vector<1xi32>
    %47 = vector.shape_cast %46 : vector<1xi32> to vector<1x1x1xi32>
    %48 = vector.extract %47[0, 0, 0] : i32 from vector<1x1x1xi32>
    %c1 = arith.constant 1 : index
    %49 = memref.load %arg3[%c1] : memref<3xi32, #tpu.memory_space<smem>>
    memref.store %48, %arg3[%c1] : memref<3xi32, #tpu.memory_space<smem>>
    %c1_16 = arith.constant 1 : index
    %50 = memref.load %arg3[%c1_16] : memref<3xi32, #tpu.memory_space<smem>>
    %51 = vector.broadcast %50 : i32 to vector<1x8xi32>
    %52 = arith.cmpi eq, %5, %51 : vector<1x8xi32>
    %53 = arith.extui %52 : vector<1x8xi1> to vector<1x8xi32>
    %54 = arith.sitofp %53 : vector<1x8xi32> to vector<1x8xf32>
    %cst_17 = arith.constant 1.000000e+05 : f32
    %55 = vector.broadcast %cst_17 : f32 to vector<1x8xf32>
    %56 = arith.mulf %55, %54 : vector<1x8xf32>
    %57 = arith.subf %30, %56 : vector<1x8xf32>
    %58 = arith.index_cast %50 : i32 to index
    %c0_18 = arith.constant 0 : index
    %59 = vector.load %arg2[%58, %c0_18] : memref<8x8xf32, #tpu.memory_space<vmem>>, vector<1x8xf32>
    %60 = arith.subf %33, %59 : vector<1x8xf32>
    %cst_19 = arith.constant 1.000000e+00 : f32
    %61 = vector.broadcast %cst_19 : f32 to vector<1x8xf32>
    %62 = arith.divf %61, %60 : vector<1x8xf32>
    %63 = arith.addf %62, %57 : vector<1x8xf32>
    %64 = vector.shape_cast %63 : vector<1x8xf32> to vector<1x1x8xf32>
    %cst_20 = arith.constant dense<0xFF800000> : vector<1xf32>
    %65 = vector.multi_reduction <maximumf>, %64, %cst_20 [1, 2] : vector<1x1x8xf32> to vector<1xf32>
    %66 = vector.shape_cast %65 : vector<1xf32> to vector<1x1x1xf32>
    %67 = vector.extract %66[0, 0, 0] : f32 from vector<1x1x1xf32>
    %68 = vector.broadcast %67 : f32 to vector<1x8xf32>
    %69 = arith.cmpf oeq, %63, %68 : vector<1x8xf32>
    %c8_i32_21 = arith.constant 8 : i32
    %70 = vector.broadcast %c8_i32_21 : i32 to vector<1x8xi32>
    %71 = arith.select %69, %5, %70 : vector<1x8xi1>, vector<1x8xi32>
    %72 = vector.shape_cast %71 : vector<1x8xi32> to vector<1x1x8xi32>
    %cst_22 = arith.constant dense<2147483647> : vector<1xi32>
    %73 = vector.multi_reduction <minsi>, %72, %cst_22 [1, 2] : vector<1x1x8xi32> to vector<1xi32>
    %74 = vector.shape_cast %73 : vector<1xi32> to vector<1x1x1xi32>
    %75 = vector.extract %74[0, 0, 0] : i32 from vector<1x1x1xi32>
    %c2 = arith.constant 2 : index
    %76 = memref.load %arg3[%c2] : memref<3xi32, #tpu.memory_space<smem>>
    memref.store %75, %arg3[%c2] : memref<3xi32, #tpu.memory_space<smem>>
    %c0_23 = arith.constant 0 : index
    %77 = memref.load %arg3[%c0_23] : memref<3xi32, #tpu.memory_space<smem>>
    %c1_24 = arith.constant 1 : index
    %78 = memref.load %arg3[%c1_24] : memref<3xi32, #tpu.memory_space<smem>>
    %c2_25 = arith.constant 2 : index
    %79 = memref.load %arg3[%c2_25] : memref<3xi32, #tpu.memory_space<smem>>
    %80 = arith.minsi %77, %78 : i32
    %81 = arith.maxsi %77, %78 : i32
    %82 = arith.minsi %81, %79 : i32
    %83 = arith.maxsi %81, %79 : i32
    %84 = arith.minsi %80, %82 : i32
    %85 = arith.maxsi %80, %82 : i32
    %86 = arith.index_cast %84 : i32 to index
    %c0_26 = arith.constant 0 : index
    %87 = vector.load %arg0[%86, %c0_26] : memref<8x32xf32, #tpu.memory_space<vmem>>, vector<1x32xf32>
    %c0_27 = arith.constant 0 : index
    %c0_28 = arith.constant 0 : index
    %88 = vector.load %arg1[%c0_27, %c0_28] : memref<3x32xf32, #tpu.memory_space<vmem>>, vector<1x32xf32>
    tpu.vector_store %arg1[%c0_27, %c0_28], %87 {strides = array<i32>} : memref<3x32xf32, #tpu.memory_space<vmem>>, vector<1x32xf32>,
    %89 = arith.index_cast %85 : i32 to index
    %c0_29 = arith.constant 0 : index
    %90 = vector.load %arg0[%89, %c0_29] : memref<8x32xf32, #tpu.memory_space<vmem>>, vector<1x32xf32>
    %c1_30 = arith.constant 1 : index
    %c0_31 = arith.constant 0 : index
    %91 = vector.load %arg1[%c1_30, %c0_31] : memref<3x32xf32, #tpu.memory_space<vmem>>, vector<1x32xf32>
    tpu.vector_store %arg1[%c1_30, %c0_31], %90 {strides = array<i32>} : memref<3x32xf32, #tpu.memory_space<vmem>>, vector<1x32xf32>,
    %92 = arith.index_cast %83 : i32 to index
    %c0_32 = arith.constant 0 : index
    %93 = vector.load %arg0[%92, %c0_32] : memref<8x32xf32, #tpu.memory_space<vmem>>, vector<1x32xf32>
    %c2_33 = arith.constant 2 : index
    %c0_34 = arith.constant 0 : index
    %94 = vector.load %arg1[%c2_33, %c0_34] : memref<3x32xf32, #tpu.memory_space<vmem>>, vector<1x32xf32>
    tpu.vector_store %arg1[%c2_33, %c0_34], %93 {strides = array<i32>} : memref<3x32xf32, #tpu.memory_space<vmem>>, vector<1x32xf32>,
    return
  }
}

</mosaic_0001>

<bundles_post_ra>
// kernel: tpu_custom_call.1
= control target key start
LH: loop header
LB: loop body
LE: loop exit
PB: predicated region body
PF: predicated region fallthrough
CT: control target
= control target key end

     0   :  { %6 = vsyncpa [#allocation5], 0  ;;  %s444_s0 = inlined_call_operand.hbm [shape: f32[8,32], index: 0, kind: input, shape index: {}]   ;;  %s445_s1 = inlined_call_operand.hbm [shape: f32[3,32], index: 1, kind: output, shape index: {}]  }
   0x1   :  { %7 = vsyncpa [#allocation6], 0  ;;  %s371_s6 = smov [#allocation4]   ;;  %s323_s10 = scalar_lea.hbm %s444_s0, 128 }
   0x2   :  { %s14_s7 = sshll.u32 %s371_s6, 4  ;;  %p324_p0 = scmp.ne.s32.totalorder %s444_s0, %s323_s10  ;;  %s15_s7 = int_to_ptr.vmem [resolvable:$true] %s14_s7 }
   0x3   :  { %p327_p1 = scmp.lt.u32.totalorder %s323_s10, %s444_s0 }
   0x5   :  { %p329_p2 = pnand %p327_p1, %p324_p0 }
   0x7   :  { %332 = shalt.err (!%p329_p2)
}
   0x8   :  { %s333_s15 = scalar_lea.vmem %s15_s7, 128  ;;  %p338_p4 = scmp.lt.s32.totalorder %s15_s7, %s15_s7 }
   0x9   :  { %p334_p3 = scmp.ne.s32.totalorder %s15_s7, %s333_s15  ;;  %p339_p5 = scmp.lt.s32.totalorder %s333_s15, %s333_s15 }
   0xb   :  { %p340_p6 = por %p339_p5, %p338_p4 }
   0xd   :  { %p341_p7 = pnand %p340_p6, %p334_p3 }
   0xf   :  { %344 = shalt.err (!%p341_p7)
}
  0x10   :  { %17 = dma.hbm_to_vmem [thread:$0]  %s444_s0, 128, %s15_s7, [#allocation5]  }
  0x11   :  { %367 = dma.done.wait [#allocation5], 128  }
  0x12   :  { %368 = vsyncadd [#allocation5], 4294967168  ;;  %v372_v0 = vmov 0.0   ;;  %vm373_vm0 = vmmov 0   ;;  %vm22_vm1 = vcmask 261120   ;;  %v21_v1 = vld [vmem:[#allocation4] sm:$0xff]  ;;  %v105_v14 = vlaneseq }
  0x13   :  { %296 = vmatprep.subr.mxu0 %v372_v0  ;;  %298 = vmatprep.mubr.msk.f32.mxu0 %vm373_vm0, %v372_v0  ;;  %vm96_vm2 = vcmask 64512   ;;  %vm148_vm6 = vcmask 57344   ;;  %s374_s27 = smov [#allocation7]  }
  0x14   :  { %297 = vmatpush3.xpose.msk.msra.mxu0 %vm22_vm1, %v21_v1  ;;  %v402_v15 = vand.u32 127, %v105_v14  ;;  %s273_s28 = sshll.u32 %s374_s27, 4  ;;  %s274_s28 = int_to_ptr.vmem [resolvable:$true] %s273_s28 }
  0x15   :  { %s345_s4 = scalar_lea.vmem %s274_s28, 64  ;;  %p350_p1 = scmp.lt.s32.totalorder %s274_s28, %s274_s28 }
  0x16   :  { %p346_p0 = scmp.ne.s32.totalorder %s274_s28, %s345_s4  ;;  %p351_p2 = scmp.lt.s32.totalorder %s345_s4, %s345_s4 }
  0x17   :  { %299 = vmatmul.mubr.msk.f32.vlgmr.msra.gmra.mrb[0].mxu0 %vm22_vm1, %v21_v1 }
  0x18   :  { %p352_p3 = por %p351_p2, %p350_p1 }
  0x1a   :  { %p353_p4 = pnand %p352_p3, %p346_p0 }
  0xea   :  { %v92_v2 = vpop.f32.mrb[0].mxu0 }
  0xeb   :  { %97 = vst.msk [vmem:[#allocation2] sm:$0xff] %vm96_vm2, %v92_v2  ;;  %v98_v3 = vsel %vm96_vm2, %v92_v2, 0.0  ;;  %v300_v4 = vpop.f32.mrb[1].mxu0 }
  0xec   :  { %v99_v5 = vrot.slane %v98_v3, 4 }
  0xee   :  { %v100_v6 = vadd.f32 %v99_v5, %v98_v3 }
  0xf0   :  { %v101_v7 = vrot.slane %v100_v6, 2 }
  0xf2   :  { %v102_v8 = vadd.f32 %v101_v7, %v100_v6 }
  0xf4   :  { %v103_v9 = vrot.slane %v102_v8, 1 }
  0xf6   :  { %v104_v10 = vadd.f32 %v103_v9, %v102_v8 }
  0xf8   :  { %317 = vrcp.f32 %v104_v10 }
 0x102   :  { %v318_v11 = vpop.eup %317 }
 0x103   :  { %v110_v12 = vsel %vm96_vm2, %v318_v11, -inf }
 0x104   :  { %111 = vmax.xlane.f32.xlu0 %v110_v12 }
 0x191   :  { %v112_v13 = vpop.xlane.xlu0 %111 }
 0x192   :  { %301 = vpush %v112_v13 }
 0x1c3   :  { %s302_s0 = spop %301 }
 0x1c4   :  { %v114_v16 = vstv %s302_s0 }
 0x1c5   :  { %vm115_vm3 = vcmp.eq.f32.partialorder %v318_v11, %v114_v16 }
 0x1c6   :  { %v116_v17 = vsel %vm115_vm3, %v402_v15, 8 }
 0x1c7   :  { %v117_v18 = vsel %vm96_vm2, %v116_v17, 2147483647  ;;  %vm259_vm2 = vcmask 253952  }
 0x1c8   :  { %v119_v19 = vshra.s32 %v117_v18, 16  ;;  %v118_v21 = vand.u32 65535, %v117_v18 }
 0x1ca   :  { %v121_v20 = vcvt.s32.f32 %v119_v19  ;;  %v120_v23 = vcvt.s32.f32 %v118_v21 }
 0x1cc   :  { %122 = vmin.xlane.f32.xlu0 %v121_v20 }
 0x259   :  { %v123_v22 = vpop.xlane.xlu0 %122 }
 0x25a   :  { %vm124_vm4 = vcmp.eq.f32.partialorder %v121_v20, %v123_v22  ;;  %v129_v25 = vcvt.f32.s32 %v123_v22 }
 0x25b   :  { %v125_v24 = vsel %vm124_vm4, %v120_v23, inf }
 0x25c   :  { %126 = vmin.xlane.f32.xlu1 %v125_v24  ;;  %v130_v27 = vshll.u32 %v129_v25, 16 }
 0x2e9   :  { %v127_v26 = vpop.xlane.xlu1 %126 }
 0x2ea   :  { %v128_v28 = vcvt.f32.s32 %v127_v26 }
 0x2ec   :  { %v131_v29 = vadd.s32 %v130_v27, %v128_v28 }
 0x2ee   :  { %303 = vpush %v131_v29 }
 0x31f   :  { %s406_s18 = spop %303 }
 0x320   :  { %v136_v30 = vstv %s406_s18  ;;  %s142_s19 = scalar_lea.vmem [#allocation2], %s406_s18 }
 0x321   :  { %v143_v31 = vld [vmem:[%s142_s19] sm:$0x1]  ;;  %vm137_vm5 = vcmp.eq.s32.totalorder %v402_v15, %v136_v30 }
 0x322   :  { %v144_v32 = vsub.f32 %v104_v10, %v143_v31  ;;  %v289_v33 = vsel %vm137_vm5, 1.0, %v372_v0 }
 0x323   :  { %v140_v34 = vmul.f32 100000.0, %v289_v33 }
 0x324   :  { %319 = vrcp.f32 %v144_v32 }
 0x325   :  { %v141_v35 = vsub.f32 0.0, %v140_v34 }
 0x32e   :  { %v320_v36 = vpop.eup %319 }
 0x32f   :  { %v147_v37 = vadd.f32 %v320_v36, %v141_v35 }
 0x331   :  { %v149_v38 = vsel %vm148_vm6, %v147_v37, -inf }
 0x332   :  { %150 = vmax.xlane.f32.xlu1 %v149_v38 }
 0x3bf   :  { %v151_v39 = vpop.xlane.xlu1 %150 }
 0x3c0   :  { %v152_v40 = vrot.slane %v151_v39, 4 }
 0x3c2   :  { %v153_v41 = vmax.f32 %v151_v39, %v152_v40 }
 0x3c4   :  { %v154_v42 = vrot.slane %v153_v41, 2 }
 0x3c6   :  { %v155_v43 = vmax.f32 %v153_v41, %v154_v42 }
 0x3c8   :  { %v156_v44 = vrot.slane %v155_v43, 1 }
 0x3ca   :  { %v157_v45 = vmax.f32 %v155_v43, %v156_v44 }
 0x3cc   :  { %305 = vpush %v157_v45 }
 0x3fd   :  { %s306_s20 = spop %305 }
 0x3fe   :  { %v159_v46 = vstv %s306_s20 }
 0x3ff   :  { %vm160_vm7 = vcmp.eq.f32.partialorder %v147_v37, %v159_v46 }
 0x400   :  { %v161_v47 = vsel %vm160_vm7, %v402_v15, 8 }
 0x401   :  { %v162_v48 = vsel %vm148_vm6, %v161_v47, 2147483647 }
 0x402   :  { %v164_v49 = vshra.s32 %v162_v48, 16  ;;  %v163_v51 = vand.u32 65535, %v162_v48 }
 0x404   :  { %v166_v50 = vcvt.s32.f32 %v164_v49  ;;  %v165_v53 = vcvt.s32.f32 %v163_v51 }
 0x406   :  { %167 = vmin.xlane.f32.xlu0 %v166_v50 }
 0x493   :  { %v168_v52 = vpop.xlane.xlu0 %167 }
 0x494   :  { %vm169_vm8 = vcmp.eq.f32.partialorder %v166_v50, %v168_v52  ;;  %v174_v55 = vcvt.f32.s32 %v168_v52 }
 0x495   :  { %v170_v54 = vsel %vm169_vm8, %v165_v53, inf }
 0x496   :  { %171 = vmin.xlane.f32.xlu1 %v170_v54  ;;  %v175_v57 = vshll.u32 %v174_v55, 16 }
 0x523   :  { %v172_v56 = vpop.xlane.xlu1 %171 }
 0x524   :  { %v173_v58 = vcvt.f32.s32 %v172_v56 }
 0x526   :  { %v176_v59 = vadd.s32 %v175_v57, %v173_v58 }
 0x528   :  { %v177_v60 = vrot.slane %v176_v59, 4 }
 0x52a   :  { %vm178_vm9 = vcmp.lt.s32.totalorder %v176_v59, %v177_v60 }
 0x52b   :  { %v179_v61 = vsel %vm178_vm9, %v176_v59, %v177_v60 }
 0x52c   :  { %v180_v62 = vrot.slane %v179_v61, 2 }
 0x52e   :  { %vm181_vm10 = vcmp.lt.s32.totalorder %v179_v61, %v180_v62 }
 0x52f   :  { %v182_v63 = vsel %vm181_vm10, %v179_v61, %v180_v62 }
 0x530   :  { %v183_v1 = vrot.slane %v182_v63, 1 }
 0x532   :  { %vm184_vm11 = vcmp.lt.s32.totalorder %v182_v63, %v183_v1 }
 0x533   :  { %v185_v2 = vsel %vm184_vm11, %v182_v63, %v183_v1 }
 0x534   :  { %307 = vpush %v185_v2 }
 0x565   :  { %s415_s21 = spop %307 }
 0x566   :  { %v190_v3 = vstv %s415_s21  ;;  %s196_s22 = scalar_lea.vmem [#allocation2], %s415_s21  ;;  %p245_p8 = scmp.lt.s32.totalorder %s406_s18, %s415_s21 }
 0x567   :  { %v197_v4 = vld [vmem:[%s196_s22] sm:$0x1]  ;;  %vm191_vm12 = vcmp.eq.s32.totalorder %v402_v15, %v190_v3  ;;  %p247_p9 = scmp.gt.s32.totalorder %s406_s18, %s415_s21 }
 0x568   :  { %v198_v5 = vsub.f32 %v144_v32, %v197_v4  ;;  %v291_v6 = vsel %vm191_vm12, 1.0, %v372_v0  ;;  %s246_s24 = scalar_select %p245_p8, %s406_s18, %s415_s21 }
 0x569   :  { %v194_v7 = vmul.f32 100000.0, %v291_v6  ;;  %s447_s18 = smov (!%p247_p9, %s406_s18), %s415_s21 }
 0x56a   :  { %321 = vrcp.f32 %v198_v5 }
 0x56b   :  { %v195_v8 = vsub.f32 %v141_v35, %v194_v7 }
 0x574   :  { %v322_v9 = vpop.eup %321 }
 0x575   :  { %v201_v10 = vadd.f32 %v322_v9, %v195_v8 }
 0x577   :  { %v202_v11 = vsel %vm148_vm6, %v201_v10, -inf }
 0x578   :  { %203 = vmax.xlane.f32.xlu0 %v202_v11 }
 0x605   :  { %v204_v12 = vpop.xlane.xlu0 %203 }
 0x606   :  { %v205_v13 = vrot.slane %v204_v12, 4 }
 0x608   :  { %v206_v14 = vmax.f32 %v204_v12, %v205_v13 }
 0x60a   :  { %v207_v16 = vrot.slane %v206_v14, 2 }
 0x60c   :  { %v208_v17 = vmax.f32 %v206_v14, %v207_v16 }
 0x60e   :  { %v209_v18 = vrot.slane %v208_v17, 1 }
 0x610   :  { %v210_v19 = vmax.f32 %v208_v17, %v209_v18 }
 0x612   :  { %309 = vpush %v210_v19 }
 0x643   :  { %s310_s23 = spop %309 }
 0x644   :  { %v212_v20 = vstv %s310_s23 }
 0x645   :  { %vm213_vm13 = vcmp.eq.f32.partialorder %v201_v10, %v212_v20 }
 0x646   :  { %v214_v0 = vsel %vm213_vm13, %v402_v15, 8 }
 0x647   :  { %v215_v21 = vsel %vm148_vm6, %v214_v0, 2147483647 }
 0x648   :  { %v217_v22 = vshra.s32 %v215_v21, 16  ;;  %v216_v24 = vand.u32 65535, %v215_v21 }
 0x64a   :  { %v219_v23 = vcvt.s32.f32 %v217_v22  ;;  %v218_v26 = vcvt.s32.f32 %v216_v24 }
 0x64c   :  { %220 = vmin.xlane.f32.xlu1 %v219_v23 }
 0x6d9   :  { %v221_v25 = vpop.xlane.xlu1 %220 }
 0x6da   :  { %vm222_vm14 = vcmp.eq.f32.partialorder %v219_v23, %v221_v25  ;;  %v227_v28 = vcvt.f32.s32 %v221_v25 }
 0x6db   :  { %v223_v27 = vsel %vm222_vm14, %v218_v26, inf }
 0x6dc   :  { %224 = vmin.xlane.f32.xlu0 %v223_v27  ;;  %v228_v15 = vshll.u32 %v227_v28, 16 }
 0x769   :  { %v225_v29 = vpop.xlane.xlu0 %224 }
 0x76a   :  { %v226_v30 = vcvt.f32.s32 %v225_v29 }
 0x76c   :  { %v229_v31 = vadd.s32 %v228_v15, %v226_v30 }
 0x76e   :  { %v230_v32 = vrot.slane %v229_v31, 4 }
 0x770   :  { %vm231_vm15 = vcmp.lt.s32.totalorder %v229_v31, %v230_v32 }
 0x771   :  { %v232_v33 = vsel %vm231_vm15, %v229_v31, %v230_v32 }
 0x772   :  { %v233_v34 = vrot.slane %v232_v33, 2 }
 0x774   :  { %vm234_vm0 = vcmp.lt.s32.totalorder %v232_v33, %v233_v34 }
 0x775   :  { %v235_v35 = vsel %vm234_vm0, %v232_v33, %v233_v34 }
 0x776   :  { %v236_v36 = vrot.slane %v235_v35, 1 }
 0x778   :  { %vm237_vm1 = vcmp.lt.s32.totalorder %v235_v35, %v236_v36 }
 0x779   :  { %v238_v37 = vsel %vm237_vm1, %v235_v35, %v236_v36 }
 0x77a   :  { %311 = vpush %v238_v37 }
 0x7ab   :  { %s312_s25 = spop %311 }
 0x7ac   :  { %p249_p10 = scmp.lt.s32.totalorder %s447_s18, %s312_s25  ;;  %p251_p11 = scmp.gt.s32.totalorder %s447_s18, %s312_s25 }
 0x7ae   :  { %s250_s26 = scalar_select %p249_p10, %s447_s18, %s312_s25 }
 0x7af   :  { %s449_s18 = smov (!%p251_p11, %s447_s18), %s312_s25 }
 0x7b0   :  { %p253_p12 = scmp.lt.s32.totalorder %s246_s24, %s250_s26  ;;  %p255_p13 = scmp.gt.s32.totalorder %s246_s24, %s250_s26 }
 0x7b1   :  { %s264_s29 = scalar_lea.vmem [#allocation4], %s449_s18 }
 0x7b2   :  { %v265_v38 = vld [vmem:[%s264_s29] sm:$0x1]  ;;  %s254_s30 = scalar_select %p253_p12, %s246_s24, %s250_s26 }
 0x7b3   :  { %s451_s24 = smov (!%p255_p13, %s246_s24), %s250_s26  ;;  %266 = vst.msk [vmem:[#allocation7 + $0x2] sm:$0x1] %vm259_vm2, %v265_v38 }
 0x7b4   :  { %s257_s2 = scalar_lea.vmem [#allocation4], %s254_s30  ;;  %s261_s3 = scalar_lea.vmem [#allocation4], %s451_s24 }
 0x7b5   :  { %v258_v39 = vld [vmem:[%s257_s2] sm:$0x1] }
 0x7b6   :  { %260 = vst.msk [vmem:[#allocation7] sm:$0x1] %vm259_vm2, %v258_v39  ;;  %v262_v40 = vld [vmem:[%s261_s3] sm:$0x1] }
 0x7b7   :  { %263 = vst.msk [vmem:[#allocation7 + $0x1] sm:$0x1] %vm259_vm2, %v262_v40 }
 0x7b8   :  { %356 = shalt.err (!%p353_p4)
}
 0x7b9   :  { %s357_s7 = scalar_lea.hbm %s445_s1, 64 }
 0x7ba   :  { %p358_p5 = scmp.ne.s32.totalorder %s445_s1, %s357_s7  ;;  %p361_p6 = scmp.lt.u32.totalorder %s357_s7, %s445_s1 }
 0x7bc   :  { %p363_p7 = pnand %p361_p6, %p358_p5 }
 0x7be   :  { %366 = shalt.err (!%p363_p7)
}
 0x7bf   :  { %276 = dma.vmem_to_hbm [thread:$0]  %s274_s28, 64, %s445_s1, [#allocation6]  }
 0x7c0   :  { %369 = dma.done.wait [#allocation6], 64  }
 0x7c1   :  { %370 = vsyncadd [#allocation6], 4294967232 }
 0x7c2   :  { %280 = vsyncpa [#allocation5], 1 }
 0x7c3   :  { %281 = vsyncpa [#allocation6], 1 }

</bundles_post_ra>
